<compile_context>
chip_gen: v7x
topology: tpu7x:2x2x1
jax: 0.10.0
libtpu: 0.0.40
codegen_flags: <defaults>
</compile_context>

<pallas_src>
import functools
import math

import jax
import jax.numpy as jnp
from jax.experimental import pallas as pl
from jax.experimental.pallas import tpu as pltpu

# Keep f32 matmul semantics faithful to the PyTorch nn.Linear (and make the
# pure-JAX reference in __main__ comparable).  bf16 streaming is an optional
# precision/bandwidth tradeoff left to the caller.
jax.config.update("jax_default_matmul_precision", "highest")

_LANE = 128
_SUBLANE = 8


def _round_up(v, m):
    return (v + m - 1) // m * m


def _vmem_budget_bytes():
    """~70% of physical VMEM (leaves headroom for compiler scratch)."""
    try:
        cap = int(pltpu.get_tpu_info().vmem_capacity_bytes)
    except Exception:  # fallback if the query is unavailable
        cap = 64 * 1024 * 1024  # v7x-safe lower bound
    return (cap * 7) // 10


def _siren_kernel(x_ref, w_ref, b_ref, o_ref, *, apply_sin, unroll_k):
    """One row tile: y = x @ W + b; o = sin(y) if apply_sin else y.

    w0 has already been folded into W and b by the wrapper, so the epilogue is
    a bare sin (no extra VPU multiply per element).
    """
    if unroll_k:
        # Tiny contraction dim (coordinate input layer): the MXU would be pure
        # waste — do K unrolled broadcast-FMAs on the VPU instead.
        x = x_ref[...].astype(jnp.float32)
        w = w_ref[...].astype(jnp.float32)
        y = b_ref[...].astype(jnp.float32)            # (1, out_f), broadcasts
        for k in range(x.shape[1]):
            y = y + x[:, k:k + 1] * w[k:k + 1, :]     # (tn,1)*(1,out_f)
    else:
        y = jnp.dot(x_ref[...], w_ref[...], preferred_element_type=jnp.float32)
        y = y + b_ref[...].astype(jnp.float32)
    if apply_sin:
        y = jnp.sin(y)
    o_ref[...] = y.astype(o_ref.dtype)


def siren_layer(x, weight_t, bias, *, w0=30.0, is_last=False, block_n=4096):
    """SIREN layer forward.

    x:        (N, in_f)     float
    weight_t: (in_f, out_f) float  (transposed nn.Linear weight)
    bias:     (out_f,)      float
    returns   (N, out_f) = sin(w0 * (x @ W + b)) unless is_last, else x @ W + b.
    """
    N, in_f = x.shape
    out_f = weight_t.shape[1]
    itemsize = jnp.dtype(x.dtype).itemsize

    # Fold w0 into the parameters for hidden layers:
    #   sin(w0 * (x W + b)) == sin(x (w0 W) + (w0 b)).
    # One-time O(in_f*out_f) cost, reused across all N rows.
    if not is_last:
        weight_t = weight_t * jnp.asarray(w0, weight_t.dtype)
        bias = bias * jnp.asarray(w0, bias.dtype)
    bias2d = bias.reshape(1, out_f)

    # ---- row-tile selection -------------------------------------------------
    budget = _vmem_budget_bytes()

    def _tile_bytes(t):
        # Double-buffered x / out tiles; W and b counted twice as well since
        # Pallas may still allocate two buffers for a constant index_map.
        return (2 * t * (in_f + out_f) + 2 * (in_f * out_f + out_f)) * itemsize

    tn = _round_up(min(block_n, _round_up(N, _SUBLANE)), _SUBLANE)
    if N > _SUBLANE:
        # Prefer >= 2 row tiles so both v7x TensorCores get work.
        tn = min(tn, _round_up(pl.cdiv(N, 2), _SUBLANE))
    while tn > _SUBLANE and _tile_bytes(tn) > budget:
        tn = max(_SUBLANE, _round_up(tn // 2, _SUBLANE))  # keep a sublane multiple
    grid_n = pl.cdiv(N, tn)  # partial final block handled by Pallas (masked stores)

    vmem_limit = int(max(budget, _tile_bytes(tn) + (1 << 20)))

    kernel = functools.partial(
        _siren_kernel, apply_sin=not is_last, unroll_k=in_f < _SUBLANE)

    return pl.pallas_call(
        kernel,
        out_shape=jax.ShapeDtypeStruct((N, out_f), x.dtype),
        grid_spec=pl.GridSpec(
            grid=(grid_n,),
            in_specs=[
                # Streamed row tiles of x (full-dim feature axis: no padding).
                pl.BlockSpec((tn, in_f), lambda i: (i, 0)),
                # Weight / bias: constant block index -> fetched once, resident.
                pl.BlockSpec((in_f, out_f), lambda i: (0, 0)),
                pl.BlockSpec((1, out_f), lambda i: (0, 0)),
            ],
            out_specs=pl.BlockSpec((tn, out_f), lambda i: (i, 0)),
        ),
        compiler_params=pltpu.CompilerParams(
            dimension_semantics=("parallel",),   # row tiles are independent
            vmem_limit_bytes=vmem_limit,
        ),
    )(x, weight_t, bias2d)


def init_siren_params(key, in_f, out_f, *, w0=30.0, is_first=False):
    """Deterministic init matching SirenLayer.__init__ / init_weights semantics."""
    kw, kb = jax.random.split(key)
    # weight: uniform(-b, b) with b = 1/in_f (first layer) or sqrt(6/in_f)/w0
    b = (1.0 / in_f) if is_first else (math.sqrt(6.0 / in_f) / w0)
    weight = jax.random.uniform(kw, (out_f, in_f), jnp.float32, minval=-b, maxval=b)
    # bias: PyTorch nn.Linear default init, uniform(-1/sqrt(in_f), 1/sqrt(in_f))
    bb = 1.0 / math.sqrt(in_f)
    bias = jax.random.uniform(kb, (out_f,), jnp.float32, minval=-bb, maxval=bb)
    # store weight transposed (in_f, out_f) so the kernel computes x @ W^T directly
    return weight.T, bias


if __name__ == "__main__":
    key = jax.random.PRNGKey(0)
    k_x, k1, k2, k3 = jax.random.split(key, 4)

    # Small SIREN: coordinates (N=50, 2) -> 32 -> 32 -> 3.
    N, in_f, hidden, out_f = 50, 2, 32, 3
    w0 = 30.0

    x = jax.random.uniform(k_x, (N, in_f), jnp.float32, minval=-1.0, maxval=1.0)
    w1, b1 = init_siren_params(k1, in_f, hidden, w0=w0, is_first=True)
    w2, b2 = init_siren_params(k2, hidden, hidden, w0=w0)
    w3, b3 = init_siren_params(k3, hidden, out_f, w0=w0)

    # Pallas forward (exercises: small-K VPU path, MXU path, last-layer path,
    # and the partial final row block since 50 % 32 != 0).
    h1 = siren_layer(x, w1, b1, w0=w0)               # in_f=2  -> unrolled VPU path
    h2 = siren_layer(h1, w2, b2, w0=w0)              # 32->32  -> MXU path
    y = siren_layer(h2, w3, b3, w0=w0, is_last=True)  # last layer, no activation
    y = jax.block_until_ready(y)

    # Pure-JAX reference (module semantics: sin(w0 * linear(x)) / plain linear).
    r1 = jnp.sin(w0 * (x @ w1 + b1))
    r2 = jnp.sin(w0 * (r1 @ w2 + b2))
    r3 = r2 @ w3 + b3

    assert h1.shape == (N, hidden) and h2.shape == (N, hidden) and y.shape == (N, out_f)
    assert jnp.allclose(h1, r1, atol=2e-3, rtol=2e-3), "layer-1 mismatch"
    assert jnp.allclose(h2, r2, atol=2e-3, rtol=2e-3), "layer-2 mismatch"
    assert jnp.allclose(y, r3, atol=2e-3, rtol=2e-3), "last-layer mismatch"

    # TODO(synk): fuse the full SIREN MLP into one kernel (all layer weights
    # VMEM-resident, activation carried in scratch) to cut HBM traffic ~L x,
    # and optionally stream x/out in bf16 on v6e/v7x as a precision tradeoff.

    print("KERNEL_OK")
</pallas_src>

<mosaic_0001>
module attributes {stable_mosaic.version = 11 : i64} {
  func.func @_siren_kernel(%arg0: i32, %arg1: memref<32x2xf32, #tpu.memory_space<vmem>>, %arg2: memref<2x32xf32, #tpu.memory_space<vmem>>, %arg3: memref<1x32xf32, #tpu.memory_space<vmem>>, %arg4: memref<32x32xf32, #tpu.memory_space<vmem>>) attributes {dimension_semantics = [#tpu.dimension_semantics<parallel>], iteration_bounds = array<i64: 2>, scalar_prefetch = 0 : i64, scratch_operands = 0 : i64, tpu.core_type = #tpu.core_type<tc>, window_params = [{transform_indices = @transform_0, window_bounds = array<i64: 32, 2>}, {pipeline_mode = #tpu.pipeline_mode<synchronous>, transform_indices = @transform_1, window_bounds = array<i64: 2, 32>}, {pipeline_mode = #tpu.pipeline_mode<synchronous>, transform_indices = @transform_2, window_bounds = array<i64: 1, 32>}, {transform_indices = @transform_3, window_bounds = array<i64: 32, 32>}]} {
    %c0 = arith.constant 0 : index
    %c0_0 = arith.constant 0 : index
    %0 = vector.load %arg1[%c0, %c0_0] : memref<32x2xf32, #tpu.memory_space<vmem>>, vector<32x2xf32>
    %c0_1 = arith.constant 0 : index
    %c0_2 = arith.constant 0 : index
    %1 = vector.load %arg2[%c0_1, %c0_2] : memref<2x32xf32, #tpu.memory_space<vmem>>, vector<2x32xf32>
    %c0_3 = arith.constant 0 : index
    %c0_4 = arith.constant 0 : index
    %2 = vector.load %arg3[%c0_3, %c0_4] : memref<1x32xf32, #tpu.memory_space<vmem>>, vector<1x32xf32>
    %3 = vector.extract_strided_slice %0 {offsets = [0, 0], sizes = [32, 1], strides = [1, 1]} : vector<32x2xf32> to vector<32x1xf32>
    %4 = vector.extract_strided_slice %1 {offsets = [0, 0], sizes = [1, 32], strides = [1, 1]} : vector<2x32xf32> to vector<1x32xf32>
    %5 = vector.broadcast %3 : vector<32x1xf32> to vector<32x32xf32>
    %6 = vector.broadcast %4 : vector<1x32xf32> to vector<32x32xf32>
    %7 = arith.mulf %5, %6 : vector<32x32xf32>
    %8 = vector.broadcast %2 : vector<1x32xf32> to vector<32x32xf32>
    %9 = arith.addf %8, %7 : vector<32x32xf32>
    %10 = vector.extract_strided_slice %0 {offsets = [0, 1], sizes = [32, 1], strides = [1, 1]} : vector<32x2xf32> to vector<32x1xf32>
    %11 = vector.extract_strided_slice %1 {offsets = [1, 0], sizes = [1, 32], strides = [1, 1]} : vector<2x32xf32> to vector<1x32xf32>
    %12 = vector.broadcast %10 : vector<32x1xf32> to vector<32x32xf32>
    %13 = vector.broadcast %11 : vector<1x32xf32> to vector<32x32xf32>
    %14 = arith.mulf %12, %13 : vector<32x32xf32>
    %15 = arith.addf %9, %14 : vector<32x32xf32>
    %16 = math.sin %15 : vector<32x32xf32>
    %c0_5 = arith.constant 0 : index
    %c0_6 = arith.constant 0 : index
    %17 = vector.load %arg4[%c0_5, %c0_6] : memref<32x32xf32, #tpu.memory_space<vmem>>, vector<32x32xf32>
    tpu.vector_store %arg4[%c0_5, %c0_6], %16 {strides = array<i32>} : memref<32x32xf32, #tpu.memory_space<vmem>>, vector<32x32xf32>,
    return
  }
  func.func @transform_0(%arg0: i32) -> (i32, i32) {
    %c0_i32 = arith.constant 0 : i32
    %c0_i32_0 = arith.constant 0 : i32
    return %arg0, %c0_i32 : i32, i32
  }
  func.func @transform_1(%arg0: i32) -> (i32, i32) {
    %c0_i32 = arith.constant 0 : i32
    %c0_i32_0 = arith.constant 0 : i32
    %c0_i32_1 = arith.constant 0 : i32
    return %c0_i32, %c0_i32_0 : i32, i32
  }
  func.func @transform_2(%arg0: i32) -> (i32, i32) {
    %c0_i32 = arith.constant 0 : i32
    %c0_i32_0 = arith.constant 0 : i32
    %c0_i32_1 = arith.constant 0 : i32
    return %c0_i32, %c0_i32_0 : i32, i32
  }
  func.func @transform_3(%arg0: i32) -> (i32, i32) {
    %c0_i32 = arith.constant 0 : i32
    %c0_i32_0 = arith.constant 0 : i32
    return %arg0, %c0_i32 : i32, i32
  }
}

</mosaic_0001>

<bundles_post_ra>
// kernel: tpu_custom_call.1
= control target key start
LH: loop header
LB: loop body
LE: loop exit
PB: predicated region body
PF: predicated region fallthrough
CT: control target
= control target key end

     0   :  { %s1204_s12 = smov 0   ;;  %s1206_s13 = smov 0   ;;  %s1613_s0 = inlined_call_operand.vmem [shape: f32[50,2], index: 0, kind: input, shape index: {}]   ;;  %s1614_s1 = inlined_call_operand.vmem [shape: f32[2,32], index: 1, kind: input, shape index: {}]   ;;  %s1615_s2 = inlined_call_operand.vmem [shape: f32[1,32], index: 2, kind: input, shape index: {}]   ;;  %s1616_s3 = inlined_call_operand.vmem [shape: f32[50,32], index: 3, kind: output, shape index: {}]  }
   0x1   :  { %s1208_s14 = smov 0  }
   0x2 LB: > { %s1217_s15 = sadd.s32 4294967295, %s1142_s14   ;;  %s1219_s16 = sadd.s32 1, %s1142_s14   ;;  %s1142_s14 = sphi %s1208_s14, %s1627_s14   ;;  %s1138_s13 = sphi %s1206_s13, %s1626_s13   ;;  %s1134_s12 = sphi %s1204_s12, %s1625_s12  }
   0x3   : > { %s85_s17 = ssub.s32 %s1142_s14, %s1219_s16  ;;  %s88_s18 = sadd.s32 1, %s1138_s13 }
   0x4   : > { %p86_p0 = scmp.eq.s32.totalorder %s85_s17, 0  ;;  %p98_p1 = scmp.ne.s32.totalorder %s1138_s13, %s1134_s12 }
   0x5   : > { %p99_p2 = scmp.eq.s32.totalorder %s1217_s15, 1  ;;  %p915_p3 = scmp.ge.s32.totalorder %s1142_s14, 1 }
   0x6   : > { %s1227_s19 = scalar_select %p86_p0, %s1138_s13, %s88_s18  }
   0x7   : > { %p1229_p4 = por %p99_p2, %p98_p1  ;;  %p146_p5 = scmp.lt.s32.totalorder %s1142_s14, 3 }
   0x9   : > { %p147_p6 = pnand %p915_p3, %p146_p5 }
   0xa   : > { %s1234_s21 = sshll.u32 (!%p147_p6), %s1217_s15, 2  ;;  %v1176_v0 = vmov (!%p147_p6), 0   ;;  %v1177_v5 = vmov (!%p147_p6), 1   ;;  %v218_v6 = vlaneseq (!%p147_p6)  ;;  %v196_v9 = vld [vmem:[%s1614_s1] sm:$0x3] (!%p147_p6)  ;;  %s170_s4 = sand.u32 (!%p147_p6), 1, %s1134_s12  }
   0xb   : > { %150 = sbr.rel (%p147_p6) target bundleno = 352 (0x160), region = 32  ;;  %1069 = vset.pattern.permute.xlu1 (!%p147_p6), %v1176_v0  ;;  %1068 = vset.pattern.permute.xlu0 (!%p147_p6), %v1176_v0  ;;  %p178_p7 = scmp.lt.s32.totalorder (!%p147_p6), %s1234_s21, 6  ;;  %v1247_v19 = vld [vmem:[%s1615_s2] ss:$0 sm:$0xff] (!%p147_p6)  ;;  %v1178_v61 = vmov (!%p147_p6), 683565275  }
   0xc   : > { %v219_v7 = vshrl.u32 (!%p147_p6), %v218_v6, 7  ;;  %s916_s5 = sshll.u32 (!%p147_p6), %s170_s4, 5 }
   0xd   : > { %s1512_s6 = scalar_lea.vmem (!%p147_p6), [#allocation2], %s916_s5  }
   0xe   : > { %v220_v8 = vsub.s32 (!%p147_p6), 0, %v219_v7  ;;  %v254_v13 = vsub.s32 (!%p147_p6), 1, %v219_v7  ;;  %v1182_v7 = vmov (!%p147_p6), 920167782  }
  0x10   : > { %v221_v12 = vrot.slane (!%p147_p6), %v196_v9, %v220_v8  ;;  %v255_v18 = vrot.slane (!%p147_p6), %v196_v9, %v254_v13 }
  0x12   : > { %s179_s22 = scalar_select %p178_p7, %s1234_s21, 6 }
  0x13   : > { %s693_s7 = ssub.s32 (%p1229_p4), 7, %s1234_s21  ;;  %s953_s8 = sshll.u32 (%p1229_p4), %s1217_s15, 5 }
  0x14   : > { %s918_s23 = sshll.u32 %s179_s22, 3  ;;  %p694_p8 = scmp.lt.s32.totalorder (%p1229_p4), %s693_s7, 4 }
  0x15   : > { %s181_s26 = scalar_lea.vmem %s1613_s0, %s918_s23  ;;  %s1564_s11 = scalar_lea.vmem (%p1229_p4), %s1616_s3, %s953_s8  }
  0x16   : > { %v194_v1 = vld [vmem:[%s181_s26 + $0x10] sm:$0xff]  ;;  %v192_v2 = vld [vmem:[%s181_s26] sm:$0xff]  ;;  %v195_v3 = vld [vmem:[%s181_s26 + $0x18] sm:$0xff] }
  0x17   : > { %210 = vperm.xlu1 %1069, %v194_v1   ;;  %200 = vperm.xlu0 %1068, %v192_v2   ;;  %v193_v4 = vld [vmem:[%s181_s26 + $0x8] sm:$0xff] }
  0x1b   : > { %215 = vperm.xlu1 %1069, %v195_v3   ;;  %205 = vperm.xlu0 %1068, %v193_v4  }
  0x1f   : > { %1071 = vset.pattern.permute.xlu1 %v1177_v5  ;;  %1070 = vset.pattern.permute.xlu0 %v1177_v5  ;;  %v1181_v5 = vmov 2102212464  }
  0x20   : > { %241 = vperm.xlu1 %1071, %v193_v4   ;;  %237 = vperm.xlu0 %1070, %v192_v2  }
  0x24   : > { %245 = vperm.xlu1 %1071, %v194_v1   ;;  %249 = vperm.xlu0 %1070, %v195_v3   ;;  %v1179_v1 = vmov 2475754826   ;;  %v1180_v3 = vmov 2131351028  }
  0x96   : > { %v211_v10 = vpop.permute.xlu1 %210  ;;  %v201_v11 = vpop.permute.xlu0 %200 }
  0x97   : > { %v222_v16 = vmul.f32 %v221_v12, %v201_v11  ;;  %v224_v26 = vmul.f32 %v221_v12, %v211_v10 }
  0x99   : > { %v232_v22 = vadd.f32 %v1247_v19, %v222_v16  ;;  %v234_v34 = vadd.f32 %v1247_v19, %v224_v26 }
  0x9a   : > { %v216_v14 = vpop.permute.xlu1 %215  ;;  %v206_v15 = vpop.permute.xlu0 %205 }
  0x9b   : > { %v223_v17 = vmul.f32 %v221_v12, %v206_v15  ;;  %v1267_v49 = vmul.f32 %v221_v12, %v216_v14  ;;  %v1183_v14 = vmov 1326507024  }
  0x9d   : > { %v233_v23 = vadd.f32 %v1247_v19, %v223_v17 }
  0x9f   : > { %v242_v20 = vpop.permute.xlu1 %241  ;;  %v238_v21 = vpop.permute.xlu0 %237 }
  0xa0   : > { %v257_v24 = vmul.f32 %v255_v18, %v242_v20  ;;  %v256_v25 = vmul.f32 %v255_v18, %v238_v21 }
  0xa2   : > { %v1251_v27 = vadd.f32 %v257_v24, %v233_v23  ;;  %v1253_v28 = vadd.f32 %v256_v25, %v232_v22 }
  0xa3   : > { %v246_v29 = vpop.permute.xlu1 %245  ;;  %v250_v48 = vpop.permute.xlu0 %249 }
  0xa4   : > { %v368_v30 = vand.u32 2147483647, %v1251_v27  ;;  %v371_v31 = vand.u32 2139095040, %v1251_v27  ;;  %v264_v32 = vand.u32 2147483647, %v1253_v28  ;;  %v267_v33 = vand.u32 2139095040, %v1253_v28 }
  0xa5   : > { %v258_v36 = vmul.f32 %v255_v18, %v246_v29  ;;  %v1269_v55 = vmul.f32 %v255_v18, %v250_v48  ;;  %vm370_vm14 = vcmp.lt.s32.totalorder %v1251_v27, 0 }
  0xa6   : > { %v372_v35 = vshrl.u32 %v371_v31, 23  ;;  %v375_v37 = vand.u32 8388607, %v368_v30  ;;  %v268_v38 = vshrl.u32 %v267_v33, 23  ;;  %v271_v39 = vand.u32 8388607, %v264_v32 }
  0xa7   : > { %v1264_v41 = vadd.f32 %v258_v36, %v234_v34  ;;  %vm1356_vm13 = vcmp.le.f32.partialorder %v368_v30, 0.7853982 }
  0xa8   : > { %v924_v40 = vadd.s32 4294967169, %v372_v35  ;;  %v920_v42 = vadd.s32 4294967169, %v268_v38  ;;  %v376_v44 = vor.u32 8388608, %v375_v37  ;;  %v272_v45 = vor.u32 8388608, %v271_v39 }
  0xa9   : > { %v475_v47 = vand.u32 2139095040, %v1264_v41  ;;  %v472_v59 = vand.u32 2147483647, %v1264_v41 }
  0xaa   : > { %v378_v43 = vadd.s32 1, %v924_v40  ;;  %v274_v46 = vadd.s32 1, %v920_v42  ;;  %v1271_v56 = vshll.u32 %v376_v44, 8  ;;  %v1275_v58 = vshll.u32 %v272_v45, 8 }
  0xab   : > { %v476_v51 = vshrl.u32 %v475_v47, 23 }
  0xac   : > { %vm379_vm0 = vcmp.gt.s32.totalorder %v378_v43, 0  ;;  %vm275_vm1 = vcmp.gt.s32.totalorder %v274_v46, 0 }
  0xad   : > { %v380_v50 = vsel %vm379_vm0, %v378_v43, 0  ;;  %v276_v54 = vsel %vm275_vm1, %v274_v46, 0  ;;  %v1279_v0 = vadd.s32 4294967169, %v476_v51 }
  0xae   : > { %v381_v52 = vshrl.u32 %v380_v50, 5  ;;  %v382_v53 = vand.u32 31, %v380_v50  ;;  %v1273_v57 = vshrl.u32 %v276_v54, 5  ;;  %v278_v63 = vand.u32 31, %v276_v54 }
  0xb0   : > { %v383_v60 = vsub.s32 32, %v382_v53  ;;  %v385_v62 = vshll.u32 %v1178_v61, %v382_v53  ;;  %v388_v2 = vshll.u32 %v1179_v1, %v382_v53  ;;  %v391_v4 = vshll.u32 %v1180_v3, %v382_v53 }
  0xb1   : > { %v394_v6 = vshll.u32 %v1181_v5, %v382_v53  ;;  %v397_v8 = vshll.u32 %v1182_v7, %v382_v53  ;;  %vm400_vm2 = vcmp.lt.s32.totalorder %v381_v52, 1  ;;  %vm401_vm3 = vcmp.lt.s32.totalorder %v381_v52, 2 }
  0xb2   : > { %v386_v9 = vshrl.u32 %v1179_v1, %v383_v60  ;;  %v389_v10 = vshrl.u32 %v1180_v3, %v383_v60  ;;  %v392_v11 = vshrl.u32 %v1181_v5, %v383_v60  ;;  %v384_v12 = vshrl.u32 %v1178_v61, %v383_v60 }
  0xb3   : > { %v395_v13 = vshrl.u32 %v1182_v7, %v383_v60  ;;  %v398_v15 = vshrl.u32 %v1183_v14, %v383_v60  ;;  %v279_v20 = vsub.s32 32, %v278_v63  ;;  %vm402_vm4 = vcmp.lt.s32.totalorder %v381_v52, 3 }
  0xb4   : > { %v387_v16 = vor.u32 %v386_v9, %v385_v62  ;;  %v390_v17 = vor.u32 %v389_v10, %v388_v2  ;;  %v393_v18 = vor.u32 %v392_v11, %v391_v4  ;;  %vm403_vm5 = vcmp.lt.s32.totalorder %v381_v52, 4 }
  0xb5   : > { %v396_v21 = vor.u32 %v395_v13, %v394_v6  ;;  %v399_v22 = vor.u32 %v398_v15, %v397_v8  ;;  %v281_v34 = vshll.u32 %v1178_v61, %v278_v63  ;;  %v282_v37 = vshrl.u32 %v1179_v1, %v279_v20 }
  0xb6   : > { %v404_v23 = vsel %vm400_vm2, %v384_v12, %v387_v16  ;;  %v405_v24 = vsel %vm403_vm5, %v393_v18, 2102212464  ;;  %v408_v25 = vsel %vm400_vm2, %v387_v16, %v390_v17  ;;  %v412_v26 = vsel %vm400_vm2, %v390_v17, %v393_v18 }
  0xb7   : > { %v406_v29 = vsel %vm402_vm4, %v390_v17, %v405_v24  ;;  %v409_v31 = vsel %vm403_vm5, %v396_v21, 920167782  ;;  %v413_v33 = vsel %vm403_vm5, %v399_v22, 1326507024  ;;  %v284_v38 = vshll.u32 %v1179_v1, %v278_v63 }
  0xb8   : > { %v410_v35 = vsel %vm402_vm4, %v393_v18, %v409_v31  ;;  %v414_v36 = vsel %vm402_vm4, %v396_v21, %v413_v33  ;;  %v407_v39 = vsel %vm401_vm3, %v404_v23, %v406_v29  ;;  %v285_v43 = vshrl.u32 %v1180_v3, %v279_v20 }
  0xb9   : > { %v411_v40 = vsel %vm401_vm3, %v408_v25, %v410_v35  ;;  %v415_v42 = vsel %vm401_vm3, %v412_v26, %v414_v36  ;;  %v283_v48 = vor.u32 %v282_v37, %v281_v34  ;;  %v287_v51 = vshll.u32 %v1180_v3, %v278_v63 }
  0xba   : > { %v1302_v44 = vmul.u32.u64.low %v1271_v56, %v415_v42  ;;  %v1303_v45 = vmul.u32.u64.high %v1271_v56, %v415_v42, %v1302_v44  ;;  %v1306_v46 = vmul.u32.u64.low %v1271_v56, %v411_v40  ;;  %v1307_v47 = vmul.u32.u64.high %v1271_v56, %v411_v40, %v1306_v46 }
  0xbb   : > { %v286_v50 = vor.u32 %v285_v43, %v284_v38  ;;  %v288_v53 = vshrl.u32 %v1181_v5, %v279_v20  ;;  %v280_v54 = vshrl.u32 %v1178_v61, %v279_v20  ;;  %v290_v52 = vshll.u32 %v1181_v5, %v278_v63 }
  0xbc   : > { %v291_v60 = vshrl.u32 %v1182_v7, %v279_v20  ;;  %v294_v62 = vshrl.u32 %v1183_v14, %v279_v20  ;;  %v423_v2 = vmul.u32 %v1271_v56, %v407_v39  ;;  %v293_v6 = vshll.u32 %v1182_v7, %v278_v63 }
  0xbd   : > { %v289_v4 = vor.u32 %v288_v53, %v287_v51  ;;  %vm296_vm6 = vcmp.lt.s32.totalorder %v1273_v57, 1  ;;  %vm425_vm7 = vc.u32 %v1303_v45, %v1306_v46  ;;  %v426_v8 = vadd.s32 1, %v1307_v47 }
  0xbe   : > { %v292_v9 = vor.u32 %v291_v60, %v290_v52  ;;  %vm297_vm8 = vcmp.lt.s32.totalorder %v1273_v57, 2  ;;  %v295_v10 = vor.u32 %v294_v62, %v293_v6  ;;  %vm298_vm9 = vcmp.lt.s32.totalorder %v1273_v57, 3 }
  0xbf   : > { %vm299_vm10 = vcmp.lt.s32.totalorder %v1273_v57, 4  ;;  %v304_v11 = vsel %vm296_vm6, %v283_v48, %v286_v50  ;;  %v427_v56 = vsel %vm425_vm7, %v426_v8, %v1307_v47  ;;  %v308_v63 = vsel %vm296_vm6, %v286_v50, %v289_v4 }
  0xc0   : > { %v301_v12 = vsel %vm299_vm10, %v289_v4, 2102212464  ;;  %v305_v13 = vsel %vm299_vm10, %v292_v9, 920167782  ;;  %v428_v15 = vadd.s32 %v427_v56, %v423_v2  ;;  %v300_v16 = vsel %vm296_vm6, %v280_v54, %v283_v48 }
  0xc1   : > { %v306_v17 = vsel %vm298_vm9, %v289_v4, %v305_v13  ;;  %v309_v18 = vsel %vm299_vm10, %v295_v10, 1326507024  ;;  %v302_v20 = vsel %vm298_vm9, %v286_v50, %v301_v12  ;;  %v482_v23 = vadd.s32 1, %v1279_v0 }
  0xc2   : > { %v307_v21 = vsel %vm297_vm8, %v304_v11, %v306_v17  ;;  %v310_v22 = vsel %vm298_vm9, %v292_v9, %v309_v18  ;;  %v429_v24 = vadd.s32 536870912, %v428_v15  ;;  %v479_v34 = vand.u32 8388607, %v472_v59 }
  0xc3   : > { %v311_v25 = vsel %vm297_vm8, %v308_v63, %v310_v22  ;;  %v1330_v26 = vmul.u32.u64.low %v1275_v58, %v307_v21  ;;  %v1331_v29 = vmul.u32.u64.high %v1275_v58, %v307_v21, %v1330_v26  ;;  %vm483_vm11 = vcmp.gt.s32.totalorder %v482_v23, 0 }
  0xc4   : > { %v1335_v31 = vmul.u32.u64.low %v1275_v58, %v311_v25  ;;  %v1336_v33 = vmul.u32.u64.high %v1275_v58, %v311_v25, %v1335_v31  ;;  %v235_v0 = vadd.f32 %v1247_v19, %v1267_v49  ;;  %v430_v35 = vshrl.u32 %v429_v24, 30 }
  0xc5   : > { %v303_v36 = vsel %vm297_vm8, %v300_v16, %v302_v20  ;;  %v484_v37 = vsel %vm483_vm11, %v482_v23, 0  ;;  %v322_v40 = vadd.s32 1, %v1331_v29  ;;  %v480_v44 = vor.u32 8388608, %v479_v34 }
  0xc6   : > { %v486_v38 = vand.u32 31, %v484_v37  ;;  %v431_v39 = vshll.u32 %v430_v35, 30  ;;  %v1346_v42 = vadd.f32 %v1269_v55, %v235_v0  ;;  %v319_v43 = vmul.u32 %v1275_v58, %v303_v36 }
  0xc7   : > { %vm321_vm12 = vc.u32 %v1336_v33, %v1330_v26  ;;  %v454_v57 = vsub.s32 4, %v430_v35  ;;  %v424_v55 = vadd.s32 %v1306_v46, %v1303_v45  ;;  %v1364_v54 = vshll.u32 %v480_v44, 8 }
  0xc8   : > { %v487_v47 = vsub.s32 32, %v486_v38  ;;  %v1351_v19 = vsub.s32 %v428_v15, %v431_v39  ;;  %v323_v49 = vsel %vm321_vm12, %v322_v40, %v1331_v29  ;;  %v579_v52 = vand.u32 2139095040, %v1346_v42 }
  0xc9   : > { %v324_v48 = vadd.s32 %v323_v49, %v319_v43  ;;  %v1368_v62 = vshrl.u32 %v484_v37, 5  ;;  %v1374_v45 = vsel %vm370_vm14, %v454_v57, %v430_v35  ;;  %v489_v4 = vshll.u32 %v1178_v61, %v486_v38 }
  0xca   : > { %v434_v58 = vsub.s32 0, %v1351_v19  ;;  %v490_v53 = vshrl.u32 %v1179_v1, %v487_v47  ;;  %v493_v30 = vshrl.u32 %v1180_v3, %v487_v47  ;;  %v496_v2 = vshrl.u32 %v1181_v5, %v487_v47 }
  0xcb   : > { %v325_v51 = vadd.s32 536870912, %v324_v48  ;;  %v499_v6 = vshrl.u32 %v1182_v7, %v487_v47  ;;  %v492_v9 = vshll.u32 %v1179_v1, %v486_v38  ;;  %v495_v10 = vshll.u32 %v1180_v3, %v486_v38 }
  0xcc   : > { %v925_v60 = vmin.u32 %v434_v58, %v1351_v19  ;;  %v502_v11 = vshrl.u32 %v1183_v14, %v487_v47  ;;  %v491_v12 = vor.u32 %v490_v53, %v489_v4  ;;  %v498_v13 = vshll.u32 %v1181_v5, %v486_v38 }
  0xcd   : > { %v1376_v46 = vshrl.u32 %v325_v51, 30  ;;  %v580_v63 = vshrl.u32 %v579_v52, 23  ;;  %v494_v16 = vor.u32 %v493_v30, %v492_v9  ;;  %v497_v17 = vor.u32 %v496_v2, %v495_v10 }
  0xce   : > { %v436_v8 = vclz %v925_v60  ;;  %v501_v18 = vshll.u32 %v1182_v7, %v486_v38  ;;  %v457_v20 = vsel %vm1356_vm13, 0, %v1374_v45  ;;  %v488_v22 = vshrl.u32 %v1178_v61, %v487_v47 }
  0xcf   : > { %v327_v56 = vshll.u32 %v1376_v46, 30  ;;  %v500_v23 = vor.u32 %v499_v6, %v498_v13  ;;  %v350_v24 = vsub.s32 4, %v1376_v46  ;;  %vm504_vm0 = vcmp.lt.s32.totalorder %v1368_v62, 1 }
  0xd0   : > { %v926_v15 = vadd.s32 4294967294, %v436_v8  ;;  %v503_v25 = vor.u32 %v502_v11, %v501_v18  ;;  %vm506_vm1 = vcmp.lt.s32.totalorder %v1368_v62, 3  ;;  %vm507_vm2 = vcmp.lt.s32.totalorder %v1368_v62, 4 }
  0xd1   : > { %v1389_v21 = vsub.s32 %v324_v48, %v327_v56  ;;  %vm266_vm3 = vcmp.lt.s32.totalorder %v1253_v28, 0  ;;  %v509_v35 = vsel %vm507_vm2, %v497_v17, 2102212464  ;;  %v512_v36 = vsel %vm504_vm0, %v491_v12, %v494_v16 }
  0xd2   : > { %vm927_vm15 = vcmp.lt.s32.totalorder %v926_v15, 0  ;;  %v513_v39 = vsel %vm507_vm2, %v500_v23, 920167782  ;;  %v516_v40 = vsel %vm504_vm0, %v494_v16, %v497_v17  ;;  %v517_v49 = vsel %vm507_vm2, %v503_v25, 1326507024 }
  0xd3   : > { %v439_v29 = vsel %vm927_vm15, 0, %v926_v15  ;;  %v330_v31 = vsub.s32 0, %v1389_v21  ;;  %v514_v47 = vsel %vm506_vm1, %v497_v17, %v513_v39  ;;  %vm1408_vm4 = vcmp.le.f32.partialorder %v264_v32, 0.7853982 }
  0xd4   : > { %v440_v34 = vsub.s32 32, %v439_v29  ;;  %v444_v0 = vsub.s32 4294967266, %v439_v29  ;;  %v441_v37 = vshll.u32 %v1351_v19, %v439_v29  ;;  %vm505_vm5 = vcmp.lt.s32.totalorder %v1368_v62, 2 }
  0xd5   : > { %v921_v38 = vmin.u32 %v330_v31, %v1389_v21  ;;  %v508_v19 = vsel %vm504_vm0, %v488_v22, %v491_v12  ;;  %v515_v53 = vsel %vm505_vm5, %v512_v36, %v514_v47  ;;  %v518_v52 = vsel %vm506_vm1, %v500_v23, %v517_v49 }
  0xd6   : > { %v442_v43 = vshrl.u32 %v424_v55, %v440_v34  ;;  %v445_v44 = vadd.s32 127, %v444_v0  ;;  %v510_v55 = vsel %vm506_vm1, %v494_v16, %v509_v35  ;;  %v519_v32 = vsel %vm505_vm5, %v516_v40, %v518_v52 }
  0xd7   : > { %v332_v48 = vclz %v921_v38  ;;  %v1420_v30 = vmul.u32.u64.low %v1364_v54, %v515_v53  ;;  %v1421_v2 = vmul.u32.u64.high %v1364_v54, %v515_v53, %v1420_v30  ;;  %v576_v8 = vand.u32 2147483647, %v1346_v42 }
  0xd8   : > { %v443_v58 = vor.u32 %v442_v43, %v441_v37  ;;  %v446_v51 = vshll.u32 %v445_v44, 23  ;;  %v1424_v4 = vmul.u32.u64.low %v1364_v54, %v519_v32  ;;  %v1425_v6 = vmul.u32.u64.high %v1364_v54, %v519_v32, %v1424_v4 }
  0xd9   : > { %v922_v60 = vadd.s32 4294967294, %v332_v48  ;;  %v320_v9 = vadd.s32 %v1330_v26, %v1336_v33  ;;  %v511_v10 = vsel %vm505_vm5, %v508_v19, %v510_v55  ;;  %v932_v62 = vadd.s32 4294967169, %v580_v63 }
  0xda   : > { %v447_v45 = vor.u32 4788187, %v446_v51  ;;  %v450_v56 = vcvt.s32.f32 %v443_v58  ;;  %v461_v12 = vadd.s32 3, %v457_v20  ;;  %v351_v17 = vsel %vm266_vm3, %v350_v24, %v1376_v46 }
  0xdb   : > { %vm923_vm6 = vcmp.lt.s32.totalorder %v922_v60, 0  ;;  %v530_v18 = vadd.s32 1, %v1421_v2  ;;  %v527_v23 = vmul.u32 %v1364_v54, %v511_v10  ;;  %vm529_vm7 = vc.u32 %v1425_v6, %v1420_v30 }
  0xdc   : > { %v448_v11 = vand.u32 2147483647, %v447_v45  ;;  %v335_v13 = vsel %vm923_vm6, 0, %v922_v60  ;;  %v586_v26 = vadd.s32 1, %v932_v62  ;;  %v353_v31 = vsel %vm1408_vm4, 0, %v351_v17 }
  0xdd   : > { %v336_v15 = vsub.s32 32, %v335_v13  ;;  %v340_v16 = vsub.s32 4294967266, %v335_v13  ;;  %v337_v33 = vshll.u32 %v1389_v21, %v335_v13  ;;  %v531_v20 = vsel %vm529_vm7, %v530_v18, %v1421_v2 }
  0xde   : > { %v451_v22 = vmul.f32 %v450_v56, %v448_v11  ;;  %v532_v34 = vadd.s32 %v531_v20, %v527_v23  ;;  %vm587_vm8 = vcmp.gt.s32.totalorder %v586_v26, 0  ;;  %v357_v38 = vadd.s32 3, %v353_v31 }
  0xdf   : > { %v338_v63 = vshrl.u32 %v320_v9, %v336_v15  ;;  %v341_v25 = vadd.s32 127, %v340_v16  ;;  %v588_v0 = vsel %vm587_vm8, %v586_v26, 0  ;;  %v583_v39 = vand.u32 8388607, %v576_v8 }
  0xe0   : > { %v452_v29 = vxor.u32 2147483648, %v451_v22  ;;  %v533_v35 = vadd.s32 536870912, %v532_v34  ;;  %v590_v36 = vand.u32 31, %v588_v0  ;;  %v1447_v40 = vand.u32 3, %v461_v12 }
  0xe1   : > { %v339_v46 = vor.u32 %v338_v63, %v337_v33  ;;  %v342_v24 = vshll.u32 %v341_v25, 23  ;;  %v1452_v55 = vand.u32 3, %v357_v38  ;;  %v1458_v51 = vadd.s32 %v1420_v30, %v1425_v6 }
  0xe2   : > { %v453_v54 = vsel %vm370_vm14, %v452_v29, %v451_v22  ;;  %v1449_v43 = vshrl.u32 %v533_v35, 30  ;;  %v591_v44 = vsub.s32 32, %v590_v36  ;;  %vm467_vm9 = vcmp.eq.s32.totalorder %v1447_v40, 2 }
  0xe3   : > { %v456_v21 = vsel %vm1356_vm13, %v1251_v27, %v453_v54  ;;  %v343_v37 = vor.u32 4788187, %v342_v24  ;;  %v346_v49 = vcvt.s32.f32 %v339_v46  ;;  %v584_v52 = vor.u32 8388608, %v583_v39 }
  0xe4   : > { %1072 = vcosq.f32 %v456_v21  ;;  %v535_v48 = vshll.u32 %v1449_v43, 30  ;;  %v594_v50 = vshrl.u32 %v1179_v1, %v591_v44  ;;  %v597_v58 = vshrl.u32 %v1180_v3, %v591_v44 }
  0xe5   : > { %1074 = vsinq.f32 %v456_v21  ;;  %v344_v47 = vand.u32 2147483647, %v343_v37  ;;  %v603_v60 = vshrl.u32 %v1182_v7, %v591_v44  ;;  %vm464_vm10 = vcmp.eq.s32.totalorder %v1447_v40, 0 }
  0xe6   : > { %v1460_v53 = vsub.s32 %v532_v34, %v535_v48  ;;  %v593_v2 = vshll.u32 %v1178_v61, %v590_v36  ;;  %v596_v45 = vshll.u32 %v1179_v1, %v590_v36  ;;  %v600_v4 = vshrl.u32 %v1181_v5, %v591_v44 }
  0xe7   : > { %v347_v19 = vmul.f32 %v346_v49, %v344_v47  ;;  %vm680_vm11 = vcmask 261120   ;;  %vm463_vm12 = vcmp.lt.s32.totalorder %v1447_v40, 2  ;;  %v1469_v6 = vshrl.u32 %v588_v0, 5 }
  0xe8   : > { %v538_v30 = vsub.s32 0, %v1460_v53  ;;  %v599_v9 = vshll.u32 %v1180_v3, %v590_v36  ;;  %v602_v10 = vshll.u32 %v1181_v5, %v590_v36  ;;  %vm460_vm13 = vweird.f32 %v1251_v27 }
  0xe9   : > { %v348_v32 = vxor.u32 2147483648, %v347_v19  ;;  %v595_v11 = vor.u32 %v594_v50, %v593_v2  ;;  %v598_v1 = vor.u32 %v597_v58, %v596_v45  ;;  %v606_v56 = vshrl.u32 %v1183_v14, %v591_v44 }
  0xea   : > { %v929_v13 = vmin.u32 %v538_v30, %v1460_v53  ;;  %v604_v15 = vor.u32 %v603_v60, %v602_v10  ;;  %v605_v3 = vshll.u32 %v1182_v7, %v590_v36  ;;  %v592_v5 = vshrl.u32 %v1178_v61, %v591_v44 }
  0xeb   : > { %v349_v62 = vsel %vm266_vm3, %v348_v32, %v347_v19  ;;  %v601_v16 = vor.u32 %v600_v4, %v599_v9  ;;  %v1484_v17 = vshll.u32 %v584_v52, 8  ;;  %vm608_vm14 = vcmp.lt.s32.totalorder %v1469_v6, 1 }
  0xec   : > { %v352_v12 = vsel %vm1408_vm4, %v1253_v28, %v349_v62  ;;  %v540_v22 = vclz %v929_v13  ;;  %v607_v14 = vor.u32 %v606_v56, %v605_v3  ;;  %vm609_vm15 = vcmp.lt.s32.totalorder %v1469_v6, 2 }
  0xed   : > { %1076 = vcosq.f32 %v352_v12  ;;  %vm611_vm0 = vcmp.lt.s32.totalorder %v1469_v6, 4  ;;  %v616_v7 = vsel %vm608_vm14, %v595_v11, %v598_v1  ;;  %vm610_vm1 = vcmp.lt.s32.totalorder %v1469_v6, 3 }
  0xee   : > { %v1073_v18 = vpop.eup %1072  ;;  %1078 = vsinq.f32 %v352_v12  ;;  %v930_v26 = vadd.s32 4294967294, %v540_v22  ;;  %v617_v33 = vsel %vm611_vm0, %v604_v15, 920167782  ;;  %v613_v25 = vsel %vm611_vm0, %v601_v16, 2102212464 }
  0xef   : > { %v1075_v23 = vpop.eup %1074  ;;  %v468_v57 = vxor.u32 2147483648, %v1073_v18  ;;  %v618_v20 = vsel %vm610_vm1, %v601_v16, %v617_v33  ;;  %v620_v29 = vsel %vm608_vm14, %v598_v1, %v601_v16  ;;  %v621_v46 = vsel %vm611_vm0, %v607_v14, 1326507024 }
  0xf0   : > { %v465_v61 = vxor.u32 2147483648, %v1075_v23  ;;  %vm931_vm2 = vcmp.lt.s32.totalorder %v930_v26, 0  ;;  %v619_v34 = vsel %vm609_vm15, %v616_v7, %v618_v20  ;;  %v612_v54 = vsel %vm608_vm14, %v592_v5, %v595_v11 }
  0xf1   : > { %v469_v63 = vsel %vm467_vm9, %v468_v57, %v1075_v23  ;;  %v543_v0 = vsel %vm931_vm2, 0, %v930_v26  ;;  %v622_v35 = vsel %vm610_vm1, %v604_v15, %v621_v46  ;;  %v614_v38 = vsel %vm610_vm1, %v598_v1, %v613_v25 }
  0xf2   : > { %v466_v31 = vsel %vm464_vm10, %v1073_v18, %v465_v61  ;;  %v544_v21 = vsub.s32 32, %v543_v0  ;;  %v548_v37 = vsub.s32 4294967266, %v543_v0  ;;  %v545_v39 = vshll.u32 %v1460_v53, %v543_v0 }
  0xf3   : > { %v470_v24 = vsel %vm463_vm12, %v466_v31, %v469_v63  ;;  %v623_v40 = vsel %vm609_vm15, %v620_v29, %v622_v35  ;;  %v1520_v44 = vmul.u32.u64.low %v1484_v17, %v619_v34  ;;  %v1521_v47 = vmul.u32.u64.high %v1484_v17, %v619_v34, %v1520_v44 }
  0xf4   : > { %v471_v36 = vsel %vm460_vm13, nan, %v470_v24  ;;  %v546_v27 = vshrl.u32 %v1458_v51, %v544_v21  ;;  %v549_v49 = vadd.s32 127, %v548_v37  ;;  %v615_v53 = vsel %vm609_vm15, %v612_v54, %v614_v38 }
  0xf5   : > { %682 = vst.msk [vmem:[%s1512_s6 + $0x8] sm:$0xff] %vm680_vm11, %v471_v36  ;;  %v1525_v48 = vmul.u32.u64.low %v1484_v17, %v623_v40  ;;  %v1526_v19 = vmul.u32.u64.high %v1484_v17, %v623_v40, %v1525_v48  ;;  %vm363_vm3 = vcmp.eq.s32.totalorder %v1452_v55, 2  ;;  %v634_v45 = vadd.s32 1, %v1521_v47 }
  0xf6   : > { %v547_v60 = vor.u32 %v546_v27, %v545_v39  ;;  %v550_v32 = vshll.u32 %v549_v49, 23  ;;  %vm356_vm4 = vweird.f32 %v1253_v28  ;;  %vm360_vm5 = vcmp.eq.s32.totalorder %v1452_v55, 0 }
  0xf7   : > { %v1077_v50 = vpop.eup %1076  ;;  %vm359_vm6 = vcmp.lt.s32.totalorder %v1452_v55, 2  ;;  %v631_v9 = vmul.u32 %v1484_v17, %v615_v53  ;;  %vm633_vm7 = vc.u32 %v1526_v19, %v1520_v44  ;;  %v558_v12 = vsub.s32 4, %v1449_v43 }
  0xf8   : > { %v1079_v58 = vpop.eup %1078  ;;  %v364_v52 = vxor.u32 2147483648, %v1077_v50  ;;  %v551_v4 = vor.u32 4788187, %v550_v32  ;;  %v554_v62 = vcvt.s32.f32 %v547_v60  ;;  %v635_v11 = vsel %vm633_vm7, %v634_v45, %v1521_v47 }
  0xf9   : > { %v361_v2 = vxor.u32 2147483648, %v1079_v58  ;;  %v636_v56 = vadd.s32 %v635_v11, %v631_v9  ;;  %vm474_vm8 = vcmp.lt.s32.totalorder %v1264_v41, 0  ;;  %vm473_vm9 = vcmp.le.f32.partialorder %v472_v59, 0.7853982 }
  0xfa   : > { %v365_v51 = vsel %vm363_vm3, %v364_v52, %v1079_v58  ;;  %v552_v10 = vand.u32 2147483647, %v551_v4  ;;  %v559_v5 = vsel %vm474_vm8, %v558_v12, %v1449_v43  ;;  %v632_v29 = vadd.s32 %v1520_v44, %v1526_v19 }
  0xfb   : > { %v362_v30 = vsel %vm360_vm5, %v1077_v50, %v361_v2  ;;  %v637_v13 = vadd.s32 536870912, %v636_v56  ;;  %v561_v18 = vsel %vm473_vm9, 0, %v559_v5  ;;  %vm564_vm14 = vweird.f32 %v1264_v41 }
  0xfc   : > { %v366_v6 = vsel %vm359_vm6, %v362_v30, %v365_v51  ;;  %v555_v28 = vmul.f32 %v554_v62, %v552_v10  ;;  %v565_v23 = vadd.s32 3, %v561_v18  ;;  %vm578_vm0 = vcmp.lt.s32.totalorder %v1346_v42, 0 }
  0xfd   : > { %v367_v1 = vsel %vm356_vm4, nan, %v366_v6  ;;  %v638_v55 = vshrl.u32 %v637_v13, 30  ;;  %vm577_vm1 = vcmp.le.f32.partialorder %v576_v8, 0.7853982  ;;  %vm668_vm5 = vweird.f32 %v1346_v42 }
  0xfe   : > { %681 = vst.msk [vmem:[%s1512_s6] sm:$0xff] %vm680_vm11, %v367_v1  ;;  %v556_v15 = vxor.u32 2147483648, %v555_v28  ;;  %v566_v61 = vand.u32 3, %v565_v23 }
  0xff   : > { %v639_v17 = vshll.u32 %v638_v55, 30  ;;  %v662_v44 = vsub.s32 4, %v638_v55 }
 0x100   : > { %v557_v3 = vsel %vm474_vm8, %v556_v15, %v555_v28  ;;  %vm568_vm12 = vcmp.eq.s32.totalorder %v566_v61, 0  ;;  %vm571_vm13 = vcmp.eq.s32.totalorder %v566_v61, 2  ;;  %vm567_vm15 = vcmp.lt.s32.totalorder %v566_v61, 2 }
 0x101   : > { %v560_v16 = vsel %vm473_vm9, %v1264_v41, %v557_v3  ;;  %v640_v22 = vsub.s32 %v636_v56, %v639_v17  ;;  %v663_v49 = vsel %vm578_vm0, %v662_v44, %v638_v55 }
 0x102   : > { %1080 = vcosq.f32 %v560_v16  ;;  %v665_v19 = vsel %vm577_vm1, 0, %v663_v49 }
 0x103   : > { %1082 = vsinq.f32 %v560_v16  ;;  %v642_v14 = vsub.s32 0, %v640_v22  ;;  %v669_v50 = vadd.s32 3, %v665_v19 }
 0x105   : > { %v933_v57 = vmin.u32 %v642_v14, %v640_v22  ;;  %v670_v58 = vand.u32 3, %v669_v50 }
 0x107   : > { %v644_v7 = vclz %v933_v57  ;;  %vm675_vm2 = vcmp.eq.s32.totalorder %v670_v58, 2  ;;  %vm672_vm3 = vcmp.eq.s32.totalorder %v670_v58, 0  ;;  %vm671_vm4 = vcmp.lt.s32.totalorder %v670_v58, 2 }
 0x109   : > { %v934_v26 = vadd.s32 4294967294, %v644_v7 }
 0x10b   : > { %vm935_vm10 = vcmp.lt.s32.totalorder %v934_v26, 0 }
 0x10c   : > { %v1081_v33 = vpop.eup %1080  ;;  %v647_v43 = vsel %vm935_vm10, 0, %v934_v26 }
 0x10d   : > { %v1083_v63 = vpop.eup %1082  ;;  %v572_v25 = vxor.u32 2147483648, %v1081_v33  ;;  %v648_v31 = vsub.s32 32, %v647_v43  ;;  %v652_v34 = vsub.s32 4294967266, %v647_v43  ;;  %v649_v0 = vshll.u32 %v640_v22, %v647_v43 }
 0x10e   : > { %v569_v59 = vxor.u32 2147483648, %v1083_v63 }
 0x10f   : > { %v573_v20 = vsel %vm571_vm13, %v572_v25, %v1083_v63  ;;  %v650_v54 = vshrl.u32 %v632_v29, %v648_v31  ;;  %v653_v35 = vadd.s32 127, %v652_v34 }
 0x110   : > { %v570_v46 = vsel %vm568_vm12, %v1081_v33, %v569_v59 }
 0x111   : > { %v574_v24 = vsel %vm567_vm15, %v570_v46, %v573_v20  ;;  %v651_v21 = vor.u32 %v650_v54, %v649_v0  ;;  %v654_v37 = vshll.u32 %v653_v35, 23 }
 0x112   : > { %v575_v36 = vsel %vm564_vm14, nan, %v574_v24 }
 0x113   : > { %683 = vst.msk [vmem:[%s1512_s6 + $0x10] sm:$0xff] %vm680_vm11, %v575_v36  ;;  %v655_v38 = vor.u32 4788187, %v654_v37  ;;  %v658_v40 = vcvt.s32.f32 %v651_v21 }
 0x115   : > { %v656_v39 = vand.u32 2147483647, %v655_v38 }
 0x117   : > { %v659_v47 = vmul.f32 %v658_v40, %v656_v39 }
 0x119   : > { %v660_v27 = vxor.u32 2147483648, %v659_v47 }
 0x11b   : > { %v661_v41 = vsel %vm578_vm0, %v660_v27, %v659_v47 }
 0x11c   : > { %v664_v48 = vsel %vm577_vm1, %v1346_v42, %v661_v41 }
 0x11d   : > { %1084 = vcosq.f32 %v664_v48 }
 0x11e   : > { %1086 = vsinq.f32 %v664_v48 }
 0x127   : > { %v1085_v52 = vpop.eup %1084 }
 0x128   : > { %v1087_v60 = vpop.eup %1086  ;;  %v676_v32 = vxor.u32 2147483648, %v1085_v52  ;;  %691 = sbr.rel (!%p1229_p4) target bundleno = 352 (0x160), region = 36 }
 0x129   : > { %v673_v53 = vxor.u32 2147483648, %v1087_v60 }
 0x12a   : > { %v677_v2 = vsel %vm675_vm2, %v676_v32, %v1087_v60 }
 0x12b   : > { %v674_v45 = vsel %vm672_vm3, %v1085_v52, %v673_v53 }
 0x12c   : > { %v678_v8 = vsel %vm671_vm4, %v674_v45, %v677_v2 }
 0x12d   : > { %v679_v51 = vsel %vm668_vm5, nan, %v678_v8 }
 0x12e   : > { %684 = vst.msk [vmem:[%s1512_s6 + $0x18] sm:$0xff] %vm680_vm11, %v679_v51 }
 0x12f   : > { %s1629_s7 = smov (!%p694_p8, %s693_s7), 4 }
 0x130   : > { %s938_s12 = sshll.u32 %s1629_s7, 7 }
 0x131   : > { %p941_p9 = scmp.eq.s32.totalorder %s938_s12, 0 }
 0x132   : > { %s1570_s14 = sshrl.u32 (!%p941_p9), %s1629_s7, 2 }
 0x133   : > { %702 = sbr.rel (%p941_p9) target bundleno = 352 (0x160), region = 40  ;;  %p942_p10 = scmp.le.s32.totalorder (!%p941_p9), %s1570_s14, 0 }
 0x13a   : > { %868 = sbr.rel (%p942_p10) target bundleno = 331 (0x14b), region = 116  ;;  %s1622_s15 = smov (!%p942_p10), %s1564_s11 }
 0x13b   : > { %s1623_s17 = smov (!%p942_p10), %s1512_s6  ;;  %s1579_s18 = smov (!%p942_p10), 0  }
 0x13c   : > { %s1156_s20 = smov (!%p942_p10), 0  }
 0x141 LB: >> { %v770_v42 = vld [vmem:[%s1150_s17] sm:$0xff]  ;;  %v772_v4 = vld [vmem:[%s1150_s17 + $0x8] sm:$0xff]  ;;  %v774_v30 = vld [vmem:[%s1150_s17 + $0x10] sm:$0xff]  ;;  %s778_s21 = sadd.s32 1, %s1154_s18  ;;  %s764_s20 = sadd.s32 1, %s1158_s20   ;;  %s1158_s20 = sphi %s1156_s20, %s764_s20   ;;  %s1154_s18 = sphi %s1579_s18, %s1624_s18   ;;  %s1150_s17 = sphi %s1623_s17, %s783_s17   ;;  %s1146_s15 = sphi %s1622_s15, %s784_s15  }
 0x142   : >> { %771 = vst [vmem:[%s1146_s15] sm:$0xff] %v770_v42  ;;  %773 = vst [vmem:[%s1146_s15 + $0x8] sm:$0xff] %v772_v4  ;;  %v776_v9 = vld [vmem:[%s1150_s17 + $0x18] sm:$0xff]  ;;  %p779_p11 = scmp.ge.s32.totalorder %s778_s21, %s1570_s14  ;;  %p763_p12 = scmp.ge.s32.totalorder %s764_s20, %s1570_s14 }
 0x143   : >> { %775 = vst [vmem:[%s1146_s15 + $0x10] sm:$0xff] %v774_v30  ;;  %777 = vst [vmem:[%s1146_s15 + $0x18] sm:$0xff] %v776_v9 }
 0x144   : >> { %s1631_s21 = smov (%p779_p11, %s778_s21), 0  ;;  %766 = sbr.rel (!%p763_p12) target bundleno = 321 (0x141), region = 122 }
 0x145   : >> { %s943_s22 = sshll.u32 %s1631_s21, 5  ;;  %s1624_s18 = smov %s1631_s21 }
 0x146   : >> { %s783_s17 = scalar_lea.vmem %s1512_s6, %s943_s22 [#allocation2]   ;;  %s784_s15 = scalar_lea.vmem %s1564_s11, %s943_s22  }
 0x14b PF: > { %s1595_s23 = sand.u32 3, %s1629_s7   ;;  %s954_s24 = sshll.u32 %s1570_s14, 5 }
 0x14c   : > { %s789_s25 = scalar_lea.vmem %s1512_s6, %s954_s24 [#allocation2]   ;;  %s791_s26 = scalar_lea.vmem %s1564_s11, %s954_s24  }
 0x14d   : > { %p948_p13 = scmp.le.s32.totalorder %s1595_s23, 0 }
 0x14e   : > { %s1160_s27 = smov (!%p948_p13), %s791_s26   ;;  %s1164_s28 = smov (!%p948_p13), %s789_s25  }
 0x14f   : > { %882 = sbr.rel (%p948_p13) target bundleno = 352 (0x160), region = 127  ;;  %s1168_s29 = smov (!%p948_p13), 0  }
 0x150   : > { %s1172_s30 = smov (!%p948_p13), 0  }
 0x156 LB: >> { %v801_v6 = vld [vmem:[%s1166_s28] sm:$0xff]  ;;  %s803_s4 = sadd.s32 1, %s1170_s29  ;;  %s795_s30 = sadd.s32 1, %s1174_s30   ;;  %s1174_s30 = sphi %s1172_s30, %s795_s30   ;;  %s1170_s29 = sphi %s1168_s29, %s1169_s29   ;;  %s1166_s28 = sphi %s1164_s28, %s808_s28   ;;  %s1162_s27 = sphi %s1160_s27, %s809_s27  }
 0x157   : >> { %802 = vst [vmem:[%s1162_s27] sm:$0xff] %v801_v6  ;;  %p804_p0 = scmp.ge.s32.totalorder %s803_s4, %s1595_s23  ;;  %p794_p1 = scmp.ge.s32.totalorder %s795_s30, %s1595_s23 }
 0x159   : >> { %s1633_s4 = smov (%p804_p0, %s803_s4), 0  ;;  %797 = sbr.rel (!%p794_p1) target bundleno = 342 (0x156), region = 133 }
 0x15a   : >> { %s949_s5 = sshll.u32 %s1633_s4, 3  ;;  %s1169_s29 = smov %s1633_s4  }
 0x15b   : >> { %s808_s28 = scalar_lea.vmem %s789_s25, %s949_s5 [#allocation2]   ;;  %s809_s27 = scalar_lea.vmem %s791_s26, %s949_s5  }
 0x160 PF: > { %p10_p2 = scmp.ge.s32.totalorder %s1219_s16, 4   ;;  %s1625_s12 = smov %s1138_s13 }
 0x161   : > { %s1626_s13 = smov %s1227_s19  ;;  %s1627_s14 = smov %s1219_s16 }
 0x162   :  { %12 = sbr.rel (!%p10_p2) target bundleno = 2 (0x2), region = 144 }

</bundles_post_ra>
